<compile_context>
chip_gen: v7x
topology: tpu7x:2x2x1
jax: 0.10.0
libtpu: 0.0.40
codegen_flags: <defaults>
</compile_context>

<pallas_src>
import functools

import jax
import jax.numpy as jnp
from jax.experimental import pallas as pl
from jax.experimental.pallas import tpu as pltpu

EPS = 1e-5
H1 = 128    # fc1 width
H2 = 32     # fc2 true width
PAD = 128   # lane-padded width for the fc2/fc3 stages


def _round_up(v, m):
    return (v + m - 1) // m * m


def _fnn_kernel(x_ref, w_ref, vec_ref, o_ref, *, din_pad, dim_out):
    n = x_ref.shape[0]
    inv_n = jnp.float32(1.0 / n)

    x = x_ref[...]                                      # (n, din_pad) bf16
    w1 = w_ref[0:din_pad, :]                            # (din_pad, 128) bf16
    w2 = w_ref[din_pad:din_pad + PAD, :]                # (128, 128) bf16, zero cols >= H2
    w3 = w_ref[din_pad + PAD:din_pad + 2 * PAD, :]      # (128, 128) bf16, zero rows >= H2,
                                                        #                 zero cols >= dim_out
    vec = vec_ref[...]                                  # (8, 128) f32 slab
    g1, be1 = vec[0:1, :], vec[1:2, :]
    g2, be2 = vec[2:3, :], vec[3:4, :]
    b3 = vec[4:5, :]

    def bn_relu(h, g, be):
        # Two independent cross-sublane reductions (overlap on the XLUs), then all BN
        # math on (1, N) rows; per-element cost is one fused mul-add + one max.
        s = jnp.sum(h, axis=0, keepdims=True)
        ss = jnp.sum(h * h, axis=0, keepdims=True)
        mean = s * inv_n
        var = jnp.maximum(ss * inv_n - mean * mean, 0.0)   # clamp: no NaN from rounding
        scale = g * jax.lax.rsqrt(var + EPS)                # (1, N), EUP rsqrt
        shift = be - mean * scale                           # (1, N)
        return jnp.maximum(h * scale + shift, 0.0)

    # ---- fc1 + bn1 + relu (fc1 bias dropped: cancelled by BN mean subtraction) ----
    h = jnp.dot(x, w1, preferred_element_type=jnp.float32)
    h = bn_relu(h, g1, be1)

    # ---- fc2 (lane-padded to 128, bias dropped) + bn2 + relu ----------------------
    h = jnp.dot(h.astype(jnp.bfloat16), w2, preferred_element_type=jnp.float32)
    h = bn_relu(h, g2, be2)

    # ---- fc3 + bias; store only the real dim_out lanes ----------------------------
    out = jnp.dot(h.astype(jnp.bfloat16), w3, preferred_element_type=jnp.float32) + b3
    o_ref[...] = out[:, :dim_out].astype(o_ref.dtype)


@functools.partial(jax.jit, static_argnames=("dim_out",))
def fnn_forward(x_bf16, w_slab, vecs, *, dim_out):
    """x_bf16: (n, din_pad) bf16 (zero-padded cols past dim_in); returns (n, dim_out) f32."""
    n, din_pad = x_bf16.shape
    flops = 2 * n * (din_pad * PAD + PAD * PAD + PAD * PAD)
    bytes_accessed = (x_bf16.size * 2 + w_slab.size * 2 + vecs.size * 4
                      + n * dim_out * 4)
    kernel = functools.partial(_fnn_kernel, din_pad=din_pad, dim_out=dim_out)
    return pl.pallas_call(
        kernel,
        out_shape=jax.ShapeDtypeStruct((n, dim_out), jnp.float32),
        in_specs=[pl.BlockSpec(memory_space=pltpu.MemorySpace.VMEM)] * 3,
        out_specs=pl.BlockSpec(memory_space=pltpu.MemorySpace.VMEM),
        cost_estimate=pl.CostEstimate(
            flops=flops, transcendentals=2 * PAD, bytes_accessed=bytes_accessed),
    )(x_bf16, w_slab, vecs)


def init_params(key, dim_in, dim_out):
    """Deterministic init mirroring nn.Linear's U(-1/sqrt(fan_in), 1/sqrt(fan_in))."""
    ks = jax.random.split(key, 6)

    def linear(kw, kb, fan_in, fan_out):
        bound = 1.0 / jnp.sqrt(fan_in)
        w = jax.random.uniform(kw, (fan_in, fan_out), jnp.float32, -bound, bound)
        b = jax.random.uniform(kb, (1, fan_out), jnp.float32, -bound, bound)
        return w, b

    w1, b1 = linear(ks[0], ks[1], dim_in, H1)
    w2, b2 = linear(ks[2], ks[3], H1, H2)
    w3, b3 = linear(ks[4], ks[5], H2, dim_out)
    return {
        "w1": w1, "b1": b1,
        "g1": jnp.ones((1, H1), jnp.float32), "be1": jnp.zeros((1, H1), jnp.float32),
        "w2": w2, "b2": b2,
        "g2": jnp.ones((1, H2), jnp.float32), "be2": jnp.zeros((1, H2), jnp.float32),
        "w3": w3, "b3": b3,
    }


def pack_params(p, dim_in, dim_out):
    """One-time packing: all weights in one bf16 slab, all per-feature rows in one f32 slab."""
    din_pad = _round_up(dim_in, 16)   # keep in-kernel bf16 sublane slices tile-aligned
    w1p = jnp.zeros((din_pad, PAD), jnp.float32).at[:dim_in, :].set(p["w1"])
    w2p = jnp.zeros((H1, PAD), jnp.float32).at[:, :H2].set(p["w2"])
    w3p = jnp.zeros((PAD, PAD), jnp.float32).at[:H2, :dim_out].set(p["w3"])
    w_slab = jnp.concatenate([w1p, w2p, w3p], axis=0).astype(jnp.bfloat16)

    def pad_row(v):
        return jnp.zeros((1, PAD), jnp.float32).at[:, :v.shape[1]].set(v)

    vecs = jnp.concatenate([
        pad_row(p["g1"]), pad_row(p["be1"]),
        pad_row(p["g2"]), pad_row(p["be2"]),
        pad_row(p["b3"]),
        jnp.zeros((3, PAD), jnp.float32),
    ], axis=0)                                                   # (8, 128) f32
    return w_slab, vecs, din_pad


def pack_input(x, din_pad):
    """Cast x to bf16 (and zero-pad feature columns if dim_in isn't 16-aligned)."""
    n, dim_in = x.shape
    if dim_in != din_pad:
        x = jnp.pad(x, ((0, 0), (0, din_pad - dim_in)))
    return x.astype(jnp.bfloat16)


def fnn_reference(x, p):
    """Pure-JAX reference with full PyTorch semantics (biases included, training-mode BN)."""
    def mm(a, w):
        return jnp.dot(a.astype(jnp.bfloat16), w.astype(jnp.bfloat16),
                       preferred_element_type=jnp.float32)

    h = mm(x, p["w1"]) + p["b1"]
    m, v = jnp.mean(h, 0, keepdims=True), jnp.var(h, 0, keepdims=True)
    h = jnp.maximum((h - m) * jax.lax.rsqrt(v + EPS) * p["g1"] + p["be1"], 0.0)
    h = mm(h, p["w2"]) + p["b2"]
    m, v = jnp.mean(h, 0, keepdims=True), jnp.var(h, 0, keepdims=True)
    h = jnp.maximum((h - m) * jax.lax.rsqrt(v + EPS) * p["g2"] + p["be2"], 0.0)
    return mm(h, p["w3"]) + p["b3"]


if __name__ == "__main__":
    key = jax.random.PRNGKey(0)
    k_x, k_p = jax.random.split(key)

    batch, dim_in, dim_out = 8, 32, 8
    x = jax.random.normal(k_x, (batch, dim_in), jnp.float32)
    params = init_params(k_p, dim_in, dim_out)

    w_slab, vecs, din_pad = pack_params(params, dim_in, dim_out)
    x_bf16 = pack_input(x, din_pad)

    out = fnn_forward(x_bf16, w_slab, vecs, dim_out=dim_out)
    out = jax.block_until_ready(out)

    ref = fnn_reference(x, params)
    assert out.shape == (batch, dim_out)
    assert jnp.allclose(out, ref, atol=2e-3, rtol=2e-3), "mismatch vs reference"

    print("KERNEL_OK")
</pallas_src>

<mosaic_0001>
module attributes {stable_mosaic.version = 11 : i64} {
  func.func @_fnn_kernel(%arg0: memref<8x32xbf16, #tpu.memory_space<vmem>>, %arg1: memref<288x128xbf16, #tpu.memory_space<vmem>>, %arg2: memref<8x128xf32, #tpu.memory_space<vmem>>, %arg3: memref<8x8xf32, #tpu.memory_space<vmem>>) attributes {dimension_semantics = [], scalar_prefetch = 0 : i64, scratch_operands = 0 : i64, tpu.core_type = #tpu.core_type<tc>} {
    %c0 = arith.constant 0 : index
    %c0_0 = arith.constant 0 : index
    %0 = vector.load %arg0[%c0, %c0_0] : memref<8x32xbf16, #tpu.memory_space<vmem>>, vector<8x32xbf16>
    %c0_1 = arith.constant 0 : index
    %c0_2 = arith.constant 0 : index
    %1 = vector.load %arg1[%c0_1, %c0_2] : memref<288x128xbf16, #tpu.memory_space<vmem>>, vector<32x128xbf16>
    %c32 = arith.constant 32 : index
    %c0_3 = arith.constant 0 : index
    %2 = vector.load %arg1[%c32, %c0_3] : memref<288x128xbf16, #tpu.memory_space<vmem>>, vector<128x128xbf16>
    %c160 = arith.constant 160 : index
    %c0_4 = arith.constant 0 : index
    %3 = vector.load %arg1[%c160, %c0_4] : memref<288x128xbf16, #tpu.memory_space<vmem>>, vector<128x128xbf16>
    %c0_5 = arith.constant 0 : index
    %c0_6 = arith.constant 0 : index
    %4 = vector.load %arg2[%c0_5, %c0_6] : memref<8x128xf32, #tpu.memory_space<vmem>>, vector<8x128xf32>
    %5 = vector.extract_strided_slice %4 {offsets = [0, 0], sizes = [1, 128], strides = [1, 1]} : vector<8x128xf32> to vector<1x128xf32>
    %6 = vector.extract_strided_slice %4 {offsets = [1, 0], sizes = [1, 128], strides = [1, 1]} : vector<8x128xf32> to vector<1x128xf32>
    %7 = vector.extract_strided_slice %4 {offsets = [2, 0], sizes = [1, 128], strides = [1, 1]} : vector<8x128xf32> to vector<1x128xf32>
    %8 = vector.extract_strided_slice %4 {offsets = [3, 0], sizes = [1, 128], strides = [1, 1]} : vector<8x128xf32> to vector<1x128xf32>
    %9 = vector.extract_strided_slice %4 {offsets = [4, 0], sizes = [1, 128], strides = [1, 1]} : vector<8x128xf32> to vector<1x128xf32>
    %cst = arith.constant dense<0.000000e+00> : vector<8x128xf32>
    %10 = tpu.matmul %0, %1, %cst {dimension_numbers = #tpu.dot_dimension_numbers<[1], [0], [0], [1], [0, 0, 1, 1], [], []>} : vector<8x32xbf16>, vector<32x128xbf16>, vector<8x128xf32> -> vector<8x128xf32>
    %cst_7 = arith.constant dense<0.000000e+00> : vector<128xf32>
    %11 = vector.multi_reduction <add>, %10, %cst_7 [0] : vector<8x128xf32> to vector<128xf32>
    %12 = vector.shape_cast %11 : vector<128xf32> to vector<1x128xf32>
    %13 = arith.mulf %10, %10 : vector<8x128xf32>
    %cst_8 = arith.constant dense<0.000000e+00> : vector<128xf32>
    %14 = vector.multi_reduction <add>, %13, %cst_8 [0] : vector<8x128xf32> to vector<128xf32>
    %15 = vector.shape_cast %14 : vector<128xf32> to vector<1x128xf32>
    %cst_9 = arith.constant 1.250000e-01 : f32
    %16 = vector.broadcast %cst_9 : f32 to vector<1x128xf32>
    %17 = arith.mulf %12, %16 : vector<1x128xf32>
    %cst_10 = arith.constant 1.250000e-01 : f32
    %18 = vector.broadcast %cst_10 : f32 to vector<1x128xf32>
    %19 = arith.mulf %15, %18 : vector<1x128xf32>
    %20 = arith.mulf %17, %17 : vector<1x128xf32>
    %21 = arith.subf %19, %20 : vector<1x128xf32>
    %cst_11 = arith.constant 0.000000e+00 : f32
    %22 = vector.broadcast %cst_11 : f32 to vector<1x128xf32>
    %23 = arith.maximumf %21, %22 : vector<1x128xf32>
    %cst_12 = arith.constant 9.99999974E-6 : f32
    %24 = vector.broadcast %cst_12 : f32 to vector<1x128xf32>
    %25 = arith.addf %23, %24 : vector<1x128xf32>
    %26 = math.rsqrt %25 : vector<1x128xf32>
    %27 = arith.mulf %5, %26 : vector<1x128xf32>
    %28 = arith.mulf %17, %27 : vector<1x128xf32>
    %29 = arith.subf %6, %28 : vector<1x128xf32>
    %30 = vector.broadcast %27 : vector<1x128xf32> to vector<8x128xf32>
    %31 = arith.mulf %10, %30 : vector<8x128xf32>
    %32 = vector.broadcast %29 : vector<1x128xf32> to vector<8x128xf32>
    %33 = arith.addf %31, %32 : vector<8x128xf32>
    %cst_13 = arith.constant 0.000000e+00 : f32
    %34 = vector.broadcast %cst_13 : f32 to vector<8x128xf32>
    %35 = arith.maximumf %33, %34 : vector<8x128xf32>
    %36 = arith.truncf %35 : vector<8x128xf32> to vector<8x128xbf16>
    %cst_14 = arith.constant dense<0.000000e+00> : vector<8x128xf32>
    %37 = tpu.matmul %36, %2, %cst_14 {dimension_numbers = #tpu.dot_dimension_numbers<[1], [0], [0], [1], [0, 0, 1, 1], [], []>} : vector<8x128xbf16>, vector<128x128xbf16>, vector<8x128xf32> -> vector<8x128xf32>
    %cst_15 = arith.constant dense<0.000000e+00> : vector<128xf32>
    %38 = vector.multi_reduction <add>, %37, %cst_15 [0] : vector<8x128xf32> to vector<128xf32>
    %39 = vector.shape_cast %38 : vector<128xf32> to vector<1x128xf32>
    %40 = arith.mulf %37, %37 : vector<8x128xf32>
    %cst_16 = arith.constant dense<0.000000e+00> : vector<128xf32>
    %41 = vector.multi_reduction <add>, %40, %cst_16 [0] : vector<8x128xf32> to vector<128xf32>
    %42 = vector.shape_cast %41 : vector<128xf32> to vector<1x128xf32>
    %cst_17 = arith.constant 1.250000e-01 : f32
    %43 = vector.broadcast %cst_17 : f32 to vector<1x128xf32>
    %44 = arith.mulf %39, %43 : vector<1x128xf32>
    %cst_18 = arith.constant 1.250000e-01 : f32
    %45 = vector.broadcast %cst_18 : f32 to vector<1x128xf32>
    %46 = arith.mulf %42, %45 : vector<1x128xf32>
    %47 = arith.mulf %44, %44 : vector<1x128xf32>
    %48 = arith.subf %46, %47 : vector<1x128xf32>
    %cst_19 = arith.constant 0.000000e+00 : f32
    %49 = vector.broadcast %cst_19 : f32 to vector<1x128xf32>
    %50 = arith.maximumf %48, %49 : vector<1x128xf32>
    %cst_20 = arith.constant 9.99999974E-6 : f32
    %51 = vector.broadcast %cst_20 : f32 to vector<1x128xf32>
    %52 = arith.addf %50, %51 : vector<1x128xf32>
    %53 = math.rsqrt %52 : vector<1x128xf32>
    %54 = arith.mulf %7, %53 : vector<1x128xf32>
    %55 = arith.mulf %44, %54 : vector<1x128xf32>
    %56 = arith.subf %8, %55 : vector<1x128xf32>
    %57 = vector.broadcast %54 : vector<1x128xf32> to vector<8x128xf32>
    %58 = arith.mulf %37, %57 : vector<8x128xf32>
    %59 = vector.broadcast %56 : vector<1x128xf32> to vector<8x128xf32>
    %60 = arith.addf %58, %59 : vector<8x128xf32>
    %cst_21 = arith.constant 0.000000e+00 : f32
    %61 = vector.broadcast %cst_21 : f32 to vector<8x128xf32>
    %62 = arith.maximumf %60, %61 : vector<8x128xf32>
    %63 = arith.truncf %62 : vector<8x128xf32> to vector<8x128xbf16>
    %cst_22 = arith.constant dense<0.000000e+00> : vector<8x128xf32>
    %64 = tpu.matmul %63, %3, %cst_22 {dimension_numbers = #tpu.dot_dimension_numbers<[1], [0], [0], [1], [0, 0, 1, 1], [], []>} : vector<8x128xbf16>, vector<128x128xbf16>, vector<8x128xf32> -> vector<8x128xf32>
    %65 = vector.broadcast %9 : vector<1x128xf32> to vector<8x128xf32>
    %66 = arith.addf %64, %65 : vector<8x128xf32>
    %67 = vector.extract_strided_slice %66 {offsets = [0, 0], sizes = [8, 8], strides = [1, 1]} : vector<8x128xf32> to vector<8x8xf32>
    %c0_23 = arith.constant 0 : index
    %c0_24 = arith.constant 0 : index
    %68 = vector.load %arg3[%c0_23, %c0_24] : memref<8x8xf32, #tpu.memory_space<vmem>>, vector<8x8xf32>
    tpu.vector_store %arg3[%c0_23, %c0_24], %67 {strides = array<i32>} : memref<8x8xf32, #tpu.memory_space<vmem>>, vector<8x8xf32>,
    return
  }
}

</mosaic_0001>

<bundles_post_ra>
// kernel: fnn_forward.1
= control target key start
LH: loop header
LB: loop body
LE: loop exit
PB: predicated region body
PF: predicated region fallthrough
CT: control target
= control target key end

     0   :  { %8 = vsyncpa [#allocation3], 0  ;;  %s744_s0 = inlined_call_operand.hbm [shape: bf16[8,32], index: 0, kind: input, shape index: {}]   ;;  %s745_s1 = inlined_call_operand.hbm [shape: bf16[288,128], index: 1, kind: input, shape index: {}]   ;;  %s746_s2 = inlined_call_operand.hbm [shape: f32[8,128], index: 2, kind: input, shape index: {}]   ;;  %s747_s3 = inlined_call_operand.hbm [shape: f32[8,8], index: 3, kind: output, shape index: {}]  }
   0x1   :  { %9 = vsyncpa [#allocation6], 0 }
   0x2   :  { %10 = vsyncpa [#allocation4], 0  ;;  %s633_s12 = smov [#allocation5]   ;;  %s539_s16 = scalar_lea.hbm %s745_s1, 2304 }
   0x3   :  { %s26_s13 = sshll.u32 %s633_s12, 4  ;;  %p540_p0 = scmp.ne.s32.totalorder %s745_s1, %s539_s16  ;;  %s27_s13 = int_to_ptr.vmem [resolvable:$true] %s26_s13 }
   0x4   :  { %p543_p1 = scmp.lt.u32.totalorder %s539_s16, %s745_s1 }
   0x6   :  { %p545_p2 = pnand %p543_p1, %p540_p0 }
   0x8   :  { %548 = shalt.err (!%p545_p2)
}
   0x9   :  { %s549_s21 = scalar_lea.vmem %s27_s13, 2304  ;;  %p554_p4 = scmp.lt.s32.totalorder %s27_s13, %s27_s13 }
   0xa   :  { %p550_p3 = scmp.ne.s32.totalorder %s27_s13, %s549_s21  ;;  %p555_p5 = scmp.lt.s32.totalorder %s549_s21, %s549_s21 }
   0xc   :  { %p556_p6 = por %p555_p5, %p554_p4 }
   0xe   :  { %p557_p7 = pnand %p556_p6, %p550_p3 }
  0x10   :  { %560 = shalt.err (!%p557_p7)
}
  0x11   :  { %s634_s22 = smov 64   ;;  %s635_s23 = smov 4  }
  0x12   :  { %32 = dma.hbm_to_vmem [thread:$0]  %s745_s1, 2304, %s27_s13, [#allocation6], %s634_s22, %s634_s22, %s635_s23  }
  0x13   :  { %s636_s26 = smov [#allocation2]   ;;  %s637_s28 = smov [#allocation7]  }
  0x14   :  { %s17_s27 = sshll.u32 %s636_s26, 4  ;;  %s39_s29 = sshll.u32 %s637_s28, 4  ;;  %s18_s27 = int_to_ptr.vmem [resolvable:$true] %s17_s27  ;;  %s40_s29 = int_to_ptr.vmem [resolvable:$true] %s39_s29 }
  0x15   :  { %s561_s5 = scalar_lea.hbm %s744_s0, 64 }
  0x16   :  { %p562_p8 = scmp.ne.s32.totalorder %s744_s0, %s561_s5  ;;  %p565_p9 = scmp.lt.u32.totalorder %s561_s5, %s744_s0 }
  0x18   :  { %p567_p10 = pnand %p565_p9, %p562_p8 }
  0x1a   :  { %570 = shalt.err (!%p567_p10)
}
  0x1b   :  { %s571_s1 = scalar_lea.vmem %s18_s27, 64  ;;  %p576_p12 = scmp.lt.s32.totalorder %s18_s27, %s18_s27 }
  0x1c   :  { %p572_p11 = scmp.ne.s32.totalorder %s18_s27, %s571_s1  ;;  %p577_p13 = scmp.lt.s32.totalorder %s571_s1, %s571_s1 }
  0x1e   :  { %p578_p0 = por %p577_p13, %p576_p12 }
  0x20   :  { %p579_p1 = pnand %p578_p0, %p572_p11 }
  0x22   :  { %582 = shalt.err (!%p579_p1)
}
  0x23   :  { %20 = dma.hbm_to_vmem [thread:$0]  %s744_s0, 64, %s18_s27, [#allocation3]  }
  0x24   :  { %s583_s14 = scalar_lea.hbm %s746_s2, 128 }
  0x25   :  { %p584_p2 = scmp.ne.s32.totalorder %s746_s2, %s583_s14  ;;  %p587_p3 = scmp.lt.u32.totalorder %s583_s14, %s746_s2 }
  0x27   :  { %p589_p4 = pnand %p587_p3, %p584_p2 }
  0x29   :  { %592 = shalt.err (!%p589_p4)
}
  0x2a   :  { %s593_s19 = scalar_lea.vmem %s40_s29, 128  ;;  %p598_p6 = scmp.lt.s32.totalorder %s40_s29, %s40_s29 }
  0x2b   :  { %p594_p5 = scmp.ne.s32.totalorder %s40_s29, %s593_s19  ;;  %p599_p7 = scmp.lt.s32.totalorder %s593_s19, %s593_s19 }
  0x2d   :  { %p600_p8 = por %p599_p7, %p598_p6 }
  0x2f   :  { %p601_p9 = pnand %p600_p8, %p594_p5 }
  0x31   :  { %604 = shalt.err (!%p601_p9)
}
  0x32   :  { %42 = dma.hbm_to_vmem [thread:$0]  %s746_s2, 128, %s40_s29, [#allocation6]  }
  0x33   :  { %627 = dma.done.wait [#allocation3], 64  }
  0x34   :  { %628 = vsyncadd [#allocation3], 4294967232 }
  0x35   :  { %629 = dma.done.wait [#allocation6], 2432  }
  0x36   :  { %630 = vsyncadd [#allocation6], 4294964864  ;;  %v638_v0 = vmov 0.0   ;;  %vm639_vm0 = vmmov 0   ;;  %v517_v1 = vld [vmem:[#allocation5] sm:$0xff]   ;;  %v518_v2 = vld [vmem:[#allocation5 + $0x8] sm:$0xff]   ;;  %v173_v35 = vlaneseq }
  0x37   :  { %461 = vmatprep.subr.bf16.mxu0 %v638_v0  ;;  %465 = vmatprep.mubr.msk.bf16.mxu0 %vm639_vm0, %v638_v0  ;;  %vm103_vm1 = vcmask 261120   ;;  %v53_v3 = vld [vmem:[#allocation2] sm:$0xf]  ;;  %v519_v4 = vld [vmem:[#allocation5 + $0x10] sm:$0xff]   ;;  %v521_v6 = vld [vmem:[#allocation5 + $0x20] sm:$0xff]   ;;  %s640_s2 = smov [#allocation8]  }
  0x38   :  { %469 = vmatprep.subr.bf16.mxu1 %v638_v0  ;;  %485 = vmatprep.mubr.msk.bf16.mxu1 %vm639_vm0, %v638_v0  ;;  %v520_v5 = vld [vmem:[#allocation5 + $0x18] sm:$0xff]   ;;  %v522_v7 = vld [vmem:[#allocation5 + $0x28] sm:$0xff]   ;;  %v523_v8 = vld [vmem:[#allocation5 + $0x30] sm:$0xff]   ;;  %v711_v36 = vshrl.u32 %v173_v35, 7  ;;  %s411_s21 = sshll.u32 %s640_s2, 4  ;;  %vm403_vm2 = vcmask 64512   ;;  %s412_s21 = int_to_ptr.vmem [resolvable:$true] %s411_s21 }
  0x39   :  { %462 = vmatpush3.bf16.msra.mxu0 %v517_v1  ;;  %470 = vmatpush3.bf16.msra.mxu1 %v519_v4  ;;  %v524_v9 = vld [vmem:[#allocation5 + $0x38] sm:$0xff]   ;;  %v525_v10 = vld [vmem:[#allocation5 + $0x40] sm:$0xff]   ;;  %v526_v11 = vld [vmem:[#allocation5 + $0x48] sm:$0xff]   ;;  %s605_s22 = scalar_lea.vmem %s412_s21, 128  ;;  %p610_p11 = scmp.lt.s32.totalorder %s412_s21, %s412_s21 }
  0x3a   :  { %463 = vmatprep.subr.bf16.mxu0 %v638_v0  ;;  %471 = vmatprep.subr.bf16.mxu1 %v638_v0  ;;  %v713_v37 = vld [vmem:[#allocation7] sm:$0xff]  ;;  %v175_v40 = vsub.s32 0, %v711_v36  ;;  %v180_v44 = vsub.s32 1, %v711_v36  ;;  %v528_v52 = vld [vmem:[#allocation5 + $0x58] sm:$0xff]   ;;  %v529_v53 = vld [vmem:[#allocation5 + $0x60] sm:$0xff]   ;;  %p606_p10 = scmp.ne.s32.totalorder %s412_s21, %s605_s22  ;;  %p611_p12 = scmp.lt.s32.totalorder %s605_s22, %s605_s22 }
  0x3b   :  { %v527_v51 = vld [vmem:[#allocation5 + $0x50] sm:$0xff]   ;;  %v530_v54 = vld [vmem:[#allocation5 + $0x68] sm:$0xff]   ;;  %v532_v56 = vld [vmem:[#allocation5 + $0x78] sm:$0xff]  }
  0x3c   :  { %v531_v55 = vld [vmem:[#allocation5 + $0x70] sm:$0xff]   ;;  %v533_v57 = vld [vmem:[#allocation5 + $0x80] sm:$0xff]   ;;  %v534_v58 = vld [vmem:[#allocation5 + $0x88] sm:$0xff]   ;;  %p612_p13 = por %p611_p12, %p610_p11 }
  0x3d   :  { %464 = vmatpush3.bf16.msra.mxu0 %v518_v2  ;;  %472 = vmatpush3.bf16.msra.mxu1 %v520_v5 }
  0x3e   :  { %489 = vmatprep.subr.bf16.mxu0 %v638_v0  ;;  %473 = vmatprep.subr.bf16.mxu1 %v638_v0  ;;  %p613_p0 = pnand %p612_p13, %p606_p10 }
  0x40   :  { %466 = vmatmul.mubr.msk.bf16.vlgmr.msra.gmra.mrb[0].mxu0 %vm103_vm1, %v53_v3 }
  0x41   :  { %505 = vmatprep.mubr.msk.bf16.mxu0 %vm639_vm0, %v638_v0  ;;  %474 = vmatpush3.bf16.msra.mxu1 %v521_v6 }
  0x42   :  { %475 = vmatprep.subr.bf16.mxu1 %v638_v0  ;;  %490 = vmatpush3.bf16.msra.mxu0 %v527_v51 }
  0x43   :  { %491 = vmatprep.subr.bf16.mxu0 %v638_v0 }
  0x45   :  { %476 = vmatpush3.bf16.msra.mxu1 %v522_v7 }
  0x46   :  { %477 = vmatprep.subr.bf16.mxu1 %v638_v0  ;;  %492 = vmatpush3.bf16.msra.mxu0 %v528_v52 }
  0x47   :  { %493 = vmatprep.subr.bf16.mxu0 %v638_v0 }
  0x49   :  { %478 = vmatpush3.bf16.msra.mxu1 %v523_v8 }
  0x4a   :  { %479 = vmatprep.subr.bf16.mxu1 %v638_v0  ;;  %494 = vmatpush3.bf16.msra.mxu0 %v529_v53 }
  0x4b   :  { %495 = vmatprep.subr.bf16.mxu0 %v638_v0 }
  0x4d   :  { %480 = vmatpush3.bf16.msra.mxu1 %v524_v9 }
  0x4e   :  { %481 = vmatprep.subr.bf16.mxu1 %v638_v0  ;;  %496 = vmatpush3.bf16.msra.mxu0 %v530_v54 }
  0x4f   :  { %497 = vmatprep.subr.bf16.mxu0 %v638_v0 }
  0x51   :  { %482 = vmatpush3.bf16.msra.mxu1 %v525_v10 }
  0x52   :  { %483 = vmatprep.subr.bf16.mxu1 %v638_v0  ;;  %498 = vmatpush3.bf16.msra.mxu0 %v531_v55 }
  0x53   :  { %499 = vmatprep.subr.bf16.mxu0 %v638_v0 }
  0x55   :  { %484 = vmatpush3.bf16.msra.mxu1 %v526_v11 }
  0x56   :  { %500 = vmatpush3.bf16.msra.mxu0 %v532_v56 }
  0x57   :  { %501 = vmatprep.subr.bf16.mxu0 %v638_v0 }
  0x5a   :  { %502 = vmatpush3.bf16.msra.mxu0 %v533_v57 }
  0x5b   :  { %503 = vmatprep.subr.bf16.mxu0 %v638_v0 }
  0x5e   :  { %504 = vmatpush3.bf16.msra.mxu0 %v534_v58 }
 0x113   :  { %v141_v12 = vpop.f32.mrb[0].mxu0 }
 0x114   :  { %v147_v13 = vrot.slane %v141_v12, 4  ;;  %v153_v14 = vmul.f32 %v141_v12, %v141_v12  ;;  %v467_v15 = vpop.f32.mrb[1].mxu0 }
 0x115   :  { %v144_v16 = vpop.f32.mrb[2].mxu0 }
 0x116   :  { %v148_v17 = vadd.f32 %v147_v13, %v141_v12  ;;  %v154_v18 = vrot.slane %v153_v14, 4  ;;  %v468_v19 = vpop.f32.mrb[3].mxu0 }
 0x118   :  { %v149_v20 = vrot.slane %v148_v17, 2  ;;  %v155_v21 = vadd.f32 %v154_v18, %v153_v14 }
 0x11a   :  { %v150_v22 = vadd.f32 %v149_v20, %v148_v17  ;;  %v156_v23 = vrot.slane %v155_v21, 2  ;;  %v301_v20 = vsub.s32 2, %v711_v36 }
 0x11c   :  { %v151_v24 = vrot.slane %v150_v22, 1  ;;  %v157_v25 = vadd.f32 %v156_v23, %v155_v21 }
 0x11e   :  { %v152_v26 = vadd.f32 %v151_v24, %v150_v22  ;;  %v158_v27 = vrot.slane %v157_v25, 1  ;;  %v306_v24 = vsub.s32 3, %v711_v36 }
 0x120   :  { %v159_v28 = vadd.f32 %v158_v27, %v157_v25  ;;  %v160_v29 = vmul.f32 0.125, %v152_v26 }
 0x122   :  { %v161_v30 = vmul.f32 0.125, %v159_v28  ;;  %v162_v31 = vmul.f32 %v160_v29, %v160_v29 }
 0x124   :  { %v163_v32 = vsub.f32 %v161_v30, %v162_v31  ;;  %v313_v31 = vsub.s32 4, %v711_v36 }
 0x126   :  { %v164_v33 = vmax.f32 %v163_v32, 0.0  ;;  %v314_v32 = vrot.slane %v713_v37, %v313_v31 }
 0x128   :  { %v165_v34 = vadd.f32 1e-05, %v164_v33 }
 0x12a   :  { %535 = vrsqrt.f32 %v165_v34 }
 0x134   :  { %v536_v38 = vpop.eup %535 }
 0x135   :  { %v167_v39 = vmul.f32 %v536_v38, %v713_v37 }
 0x137   :  { %v168_v41 = vmul.f32 %v167_v39, %v160_v29  ;;  %v176_v42 = vrot.slane %v167_v39, %v175_v40 }
 0x139   :  { %v170_v43 = vrot.slane %v168_v41, 7  ;;  %v177_v46 = vmul.f32 %v176_v42, %v141_v12 }
 0x13b   :  { %v172_v45 = vsub.f32 %v713_v37, %v170_v43 }
 0x13d   :  { %v181_v47 = vrot.slane %v172_v45, %v180_v44 }
 0x13f   :  { %v182_v48 = vadd.f32 %v181_v47, %v177_v46 }
 0x141   :  { %v183_v49 = vmax.f32 %v182_v48, 0.0 }
 0x143   :  { %v184_v50 = vpack.c.bf16 %v183_v49, %v183_v49 }
 0x145   :  { %486 = vmatmul.mubr.bf16.vlgmr.msra.gmra.mrb[0].mxu1 %v184_v50 }
 0x218   :  { %v267_v59 = vpop.f32.mrb[0].mxu1 }
 0x219   :  { %v273_v60 = vrot.slane %v267_v59, 4  ;;  %v279_v61 = vmul.f32 %v267_v59, %v267_v59  ;;  %v487_v62 = vpop.f32.mrb[1].mxu1 }
 0x21a   :  { %v270_v63 = vpop.f32.mrb[2].mxu1 }
 0x21b   :  { %v274_v1 = vadd.f32 %v273_v60, %v267_v59  ;;  %v280_v2 = vrot.slane %v279_v61, 4  ;;  %v488_v3 = vpop.f32.mrb[3].mxu1 }
 0x21d   :  { %v275_v4 = vrot.slane %v274_v1, 2  ;;  %v281_v5 = vadd.f32 %v280_v2, %v279_v61 }
 0x21f   :  { %v276_v6 = vadd.f32 %v275_v4, %v274_v1  ;;  %v282_v7 = vrot.slane %v281_v5, 2 }
 0x221   :  { %v277_v8 = vrot.slane %v276_v6, 1  ;;  %v283_v9 = vadd.f32 %v282_v7, %v281_v5 }
 0x223   :  { %v278_v10 = vadd.f32 %v277_v8, %v276_v6  ;;  %v284_v11 = vrot.slane %v283_v9, 1 }
 0x225   :  { %v285_v12 = vadd.f32 %v284_v11, %v283_v9  ;;  %v286_v0 = vmul.f32 0.125, %v278_v10 }
 0x227   :  { %v287_v13 = vmul.f32 0.125, %v285_v12  ;;  %v288_v14 = vmul.f32 %v286_v0, %v286_v0 }
 0x229   :  { %v289_v15 = vsub.f32 %v287_v13, %v288_v14 }
 0x22b   :  { %v290_v16 = vmax.f32 %v289_v15, 0.0 }
 0x22d   :  { %v291_v17 = vadd.f32 1e-05, %v290_v16 }
 0x22f   :  { %537 = vrsqrt.f32 %v291_v17 }
 0x239   :  { %v538_v18 = vpop.eup %537 }
 0x23a   :  { %v293_v19 = vmul.f32 %v538_v18, %v713_v37 }
 0x23c   :  { %v294_v21 = vmul.f32 %v293_v19, %v286_v0  ;;  %v302_v23 = vrot.slane %v293_v19, %v301_v20 }
 0x23e   :  { %v296_v22 = vrot.slane %v294_v21, 7  ;;  %v303_v26 = vmul.f32 %v302_v23, %v267_v59 }
 0x240   :  { %v298_v25 = vsub.f32 %v713_v37, %v296_v22 }
 0x242   :  { %v307_v27 = vrot.slane %v298_v25, %v306_v24 }
 0x244   :  { %v308_v28 = vadd.f32 %v307_v27, %v303_v26 }
 0x246   :  { %v309_v29 = vmax.f32 %v308_v28, 0.0 }
 0x248   :  { %v310_v30 = vpack.c.bf16 %v309_v29, %v309_v29 }
 0x24a   :  { %506 = vmatmul.mubr.bf16.vlgmr.msra.gmra.mrb[4].mxu0 %v310_v30 }
 0x31d   :  { %v397_v33 = vpop.f32.mrb[4].mxu0 }
 0x31e   :  { %v398_v34 = vadd.f32 %v397_v33, %v314_v32  ;;  %v507_v35 = vpop.f32.mrb[5].mxu0 }
 0x31f   :  { %v400_v38 = vpop.f32.mrb[6].mxu0 }
 0x320   :  { %v508_v39 = vpop.f32.mrb[7].mxu0  ;;  %404 = vst.msk [vmem:[#allocation8] sm:$0xff] %vm403_vm2, %v398_v34 }
 0x321   :  { %616 = shalt.err (!%p613_p0)
}
 0x322   :  { %s617_s25 = scalar_lea.hbm %s747_s3, 128 }
 0x323   :  { %p618_p1 = scmp.ne.s32.totalorder %s747_s3, %s617_s25  ;;  %p621_p2 = scmp.lt.u32.totalorder %s617_s25, %s747_s3 }
 0x325   :  { %p623_p3 = pnand %p621_p2, %p618_p1 }
 0x327   :  { %626 = shalt.err (!%p623_p3)
}
 0x328   :  { %414 = dma.vmem_to_hbm [thread:$0]  %s412_s21, 128, %s747_s3, [#allocation4]  }
 0x329   :  { %631 = dma.done.wait [#allocation4], 128  }
 0x32a   :  { %632 = vsyncadd [#allocation4], 4294967168 }
 0x32b   :  { %418 = vsyncpa [#allocation3], 1 }
 0x32c   :  { %419 = vsyncpa [#allocation6], 1 }
 0x32d   :  { %420 = vsyncpa [#allocation4], 1 }

</bundles_post_ra>
